<compile_context>
chip_gen: v7x
topology: tpu7x:2x2x1
jax: 0.10.0
libtpu: 0.0.40
codegen_flags: <defaults>
</compile_context>

<pallas_src>
import jax
import jax.numpy as jnp
from jax.experimental import pallas as pl
from jax.experimental.pallas import tpu as pltpu

IN_FEATURES = 784
OUT_FEATURES = 10


def netv1_kernel(x_ref, w_ref, o_ref):
    # x_ref: (tb, 784) f32 (streamed), w_ref: (784, 10) f32 (resident across steps)
    logits = jnp.dot(x_ref[...], w_ref[...], preferred_element_type=jnp.float32)
    # torch: h = exp(logits); z = sum(h, dim=1, keepdim=True); out = h / z
    # Max-subtraction is mathematically identical (softmax) and numerically safe.
    m = jnp.max(logits, axis=-1, keepdims=True)
    e = jnp.exp(logits - m)
    s = jnp.sum(e, axis=-1, keepdims=True)
    o_ref[...] = (e / s).astype(o_ref.dtype)


def netv1_forward(x, w, *, tile_b=1024, core_parallel=False):
    B, F = x.shape
    Fw, N = w.shape
    assert F == Fw

    if B <= tile_b:
        tb = B          # single block == full array -> no (8,128) divisibility issue
    else:
        assert tile_b % 8 == 0, "tile_b must be a multiple of 8 (sublane)"
        tb = tile_b     # multiple of 256 by default -> fills MXU rows on v6e/v7x

    num_tiles = pl.cdiv(B, tb)   # partial last block handled by Pallas (no jnp.pad)

    # x stream: deeper buffering only when there are enough steps to benefit.
    x_spec_kwargs = {}
    x_buffers = 2
    if num_tiles > 2:
        x_buffers = 3
        x_spec_kwargs["pipeline_mode"] = pl.Buffered(x_buffers)
    x_spec = pl.BlockSpec((tb, F), lambda i: (i, 0), **x_spec_kwargs)
    w_spec = pl.BlockSpec((F, N), lambda i: (0, 0))       # constant block -> resident
    o_spec = pl.BlockSpec((tb, N), lambda i: (i, 0))

    # v7x: CORE_PARALLEL actually splits batch tiles across the two TensorCores;
    # plain "parallel" is a near-no-op but harmless on single-TC chips.
    dims = (pltpu.CORE_PARALLEL,) if core_parallel else ("parallel",)

    # Only raise the scoped-VMEM limit if a large tile actually needs it (v5e default
    # is 16 MiB); default tile_b=1024 stays well under every chip's default.
    vmem_needed = (x_buffers * tb * F * x.dtype.itemsize
                   + 2 * F * N * w.dtype.itemsize
                   + 2 * tb * N * 4)
    vmem_limit = None
    if vmem_needed > (12 << 20):
        vmem_limit = min(vmem_needed + (8 << 20), 56 << 20)

    out = pl.pallas_call(
        netv1_kernel,
        out_shape=jax.ShapeDtypeStruct((B, N), jnp.float32),
        grid=(num_tiles,),
        in_specs=[x_spec, w_spec],
        out_specs=o_spec,
        compiler_params=pltpu.CompilerParams(
            dimension_semantics=dims,
            vmem_limit_bytes=vmem_limit,
        ),
        cost_estimate=pl.CostEstimate(
            flops=2 * B * F * N,
            transcendentals=B * N,
            bytes_accessed=x.size * x.dtype.itemsize
            + w.size * w.dtype.itemsize
            + B * N * 4,
        ),
    )(x, w)

    return out


def reference_forward(x, w):
    # Same math as the PyTorch module, in plain JAX (f32 throughout).
    logits = jnp.dot(x, w, preferred_element_type=jnp.float32)
    return jax.nn.softmax(logits, axis=1)   # == exp(h) / sum(exp(h), dim=1)


if __name__ == "__main__":
    key = jax.random.PRNGKey(0)
    kx, kw = jax.random.split(key)

    B = 8
    x = jax.random.normal(kx, (B, IN_FEATURES), dtype=jnp.float32)
    # mirrors nn.Parameter(torch.randn(784, 10))
    w = jax.random.normal(kw, (IN_FEATURES, OUT_FEATURES), dtype=jnp.float32)

    out = jax.block_until_ready(netv1_forward(x, w))
    ref = reference_forward(x, w)

    assert out.shape == (B, OUT_FEATURES)
    # exact divide -> rows sum to 1 to f32 precision
    assert jnp.allclose(jnp.sum(out, axis=1), 1.0, atol=1e-4)
    assert jnp.allclose(out, ref, atol=2e-3, rtol=1e-2)

    print("KERNEL_OK")
</pallas_src>

<mosaic_0001>
module attributes {stable_mosaic.version = 11 : i64} {
  func.func @netv1_kernel(%arg0: i32, %arg1: memref<8x784xf32, #tpu.memory_space<vmem>>, %arg2: memref<784x10xf32, #tpu.memory_space<vmem>>, %arg3: memref<8x10xf32, #tpu.memory_space<vmem>>) attributes {dimension_semantics = [#tpu.dimension_semantics<parallel>], iteration_bounds = array<i64: 1>, scalar_prefetch = 0 : i64, scratch_operands = 0 : i64, tpu.core_type = #tpu.core_type<tc>, window_params = [{transform_indices = @transform_0, window_bounds = array<i64: 8, 784>}, {pipeline_mode = #tpu.pipeline_mode<synchronous>, transform_indices = @transform_1, window_bounds = array<i64: 784, 10>}, {transform_indices = @transform_2, window_bounds = array<i64: 8, 10>}]} {
    %c0 = arith.constant 0 : index
    %c0_0 = arith.constant 0 : index
    %0 = vector.load %arg1[%c0, %c0_0] : memref<8x784xf32, #tpu.memory_space<vmem>>, vector<8x784xf32>
    %c0_1 = arith.constant 0 : index
    %c0_2 = arith.constant 0 : index
    %1 = vector.load %arg2[%c0_1, %c0_2] : memref<784x10xf32, #tpu.memory_space<vmem>>, vector<784x10xf32>
    %cst = arith.constant dense<0.000000e+00> : vector<8x10xf32>
    %2 = tpu.matmul %0, %1, %cst {dimension_numbers = #tpu.dot_dimension_numbers<[1], [0], [0], [1], [0, 0, 1, 1], [], []>} : vector<8x784xf32>, vector<784x10xf32>, vector<8x10xf32> -> vector<8x10xf32>
    %cst_3 = arith.constant dense<0xFF800000> : vector<8xf32>
    %3 = vector.multi_reduction <maximumf>, %2, %cst_3 [1] : vector<8x10xf32> to vector<8xf32>
    %4 = vector.shape_cast %3 : vector<8xf32> to vector<8x1xf32>
    %5 = vector.broadcast %4 : vector<8x1xf32> to vector<8x10xf32>
    %6 = arith.subf %2, %5 : vector<8x10xf32>
    %7 = math.exp %6 : vector<8x10xf32>
    %cst_4 = arith.constant dense<0.000000e+00> : vector<8xf32>
    %8 = vector.multi_reduction <add>, %7, %cst_4 [1] : vector<8x10xf32> to vector<8xf32>
    %9 = vector.shape_cast %8 : vector<8xf32> to vector<8x1xf32>
    %10 = vector.broadcast %9 : vector<8x1xf32> to vector<8x10xf32>
    %11 = arith.divf %7, %10 : vector<8x10xf32>
    %c0_5 = arith.constant 0 : index
    %c0_6 = arith.constant 0 : index
    %12 = vector.load %arg3[%c0_5, %c0_6] : memref<8x10xf32, #tpu.memory_space<vmem>>, vector<8x10xf32>
    tpu.vector_store %arg3[%c0_5, %c0_6], %11 {strides = array<i32>} : memref<8x10xf32, #tpu.memory_space<vmem>>, vector<8x10xf32>,
    return
  }
  func.func @transform_0(%arg0: i32) -> (i32, i32) {
    %c0_i32 = arith.constant 0 : i32
    %c0_i32_0 = arith.constant 0 : i32
    return %arg0, %c0_i32 : i32, i32
  }
  func.func @transform_1(%arg0: i32) -> (i32, i32) {
    %c0_i32 = arith.constant 0 : i32
    %c0_i32_0 = arith.constant 0 : i32
    %c0_i32_1 = arith.constant 0 : i32
    return %c0_i32, %c0_i32_0 : i32, i32
  }
  func.func @transform_2(%arg0: i32) -> (i32, i32) {
    %c0_i32 = arith.constant 0 : i32
    %c0_i32_0 = arith.constant 0 : i32
    return %arg0, %c0_i32 : i32, i32
  }
}

</mosaic_0001>

<bundles_post_ra>
// kernel: tpu_custom_call.1
= control target key start
LH: loop header
LB: loop body
LE: loop exit
PB: predicated region body
PF: predicated region fallthrough
CT: control target
= control target key end

     0   :  { %s1024_s0 = inlined_call_operand.vmem [shape: f32[8,784], index: 0, kind: input, shape index: {}]   ;;  %s1025_s1 = inlined_call_operand.vmem [shape: f32[784,10], index: 1, kind: input, shape index: {}]   ;;  %s1026_s2 = inlined_call_operand.hbm [shape: f32[8,10], index: 2, kind: output, shape index: {}]  }
   0x1   :  { %v35_v0 = vld [vmem:[%s1025_s1 + $0x80] sm:$0xff]  ;;  %v36_v1 = vld [vmem:[%s1025_s1 + $0x88] sm:$0xff]  ;;  %v37_v11 = vld [vmem:[%s1025_s1 + $0x90] sm:$0xff] }
   0x2   :  { %v67_v2 = vld [vmem:[%s1025_s1 + $0x180] sm:$0xff]  ;;  %v544_v3 = vpack.c.bf16 %v36_v1, %v35_v0  ;;  %v68_v4 = vld [vmem:[%s1025_s1 + $0x188] sm:$0xff]  ;;  %v38_v13 = vld [vmem:[%s1025_s1 + $0x98] sm:$0xff] }
   0x3   :  { %v19_v5 = vld [vmem:[%s1025_s1] sm:$0xff]  ;;  %v20_v6 = vld [vmem:[%s1025_s1 + $0x8] sm:$0xff]  ;;  %v576_v7 = vpack.c.bf16 %v68_v4, %v67_v2  ;;  %v69_v14 = vld [vmem:[%s1025_s1 + $0x190] sm:$0xff]  ;;  %v548_v16 = vpack.c.bf16 %v38_v13, %v37_v11 }
   0x4   :  { %v546_v8 = vpack.c.bf16 %v20_v6, %v19_v5  ;;  %v51_v9 = vld [vmem:[%s1025_s1 + $0x100] sm:$0xff]  ;;  %v52_v10 = vld [vmem:[%s1025_s1 + $0x108] sm:$0xff]  ;;  %545 = vmatprep.subr.bf16.mxu0 %v544_v3  ;;  %v70_v15 = vld [vmem:[%s1025_s1 + $0x198] sm:$0xff] }
   0x5   :  { %v578_v12 = vpack.c.bf16 %v52_v10, %v51_v9  ;;  %577 = vmatprep.subr.bf16.mxu1 %v576_v7  ;;  %v580_v17 = vpack.c.bf16 %v70_v15, %v69_v14  ;;  %v21_v18 = vld [vmem:[%s1025_s1 + $0x10] sm:$0xff]  ;;  %v22_v19 = vld [vmem:[%s1025_s1 + $0x18] sm:$0xff]  ;;  %v39_v23 = vld [vmem:[%s1025_s1 + $0xa0] sm:$0xff] }
   0x6   :  { %547 = vmatpush3.bf16.msra.mxu0 %v546_v8  ;;  %v53_v20 = vld [vmem:[%s1025_s1 + $0x110] sm:$0xff]  ;;  %v550_v21 = vpack.c.bf16 %v22_v19, %v21_v18  ;;  %v54_v22 = vld [vmem:[%s1025_s1 + $0x118] sm:$0xff]  ;;  %v40_v24 = vld [vmem:[%s1025_s1 + $0xa8] sm:$0xff] }
   0x7   :  { %579 = vmatpush3.bf16.msra.mxu1 %v578_v12  ;;  %549 = vmatprep.subr.bf16.mxu0 %v548_v16  ;;  %v582_v25 = vpack.c.bf16 %v54_v22, %v53_v20  ;;  %v552_v26 = vpack.c.bf16 %v40_v24, %v39_v23  ;;  %v71_v27 = vld [vmem:[%s1025_s1 + $0x1a0] sm:$0xff]  ;;  %v72_v28 = vld [vmem:[%s1025_s1 + $0x1a8] sm:$0xff]  ;;  %v41_v35 = vld [vmem:[%s1025_s1 + $0xb0] sm:$0xff] }
   0x8   :  { %581 = vmatprep.subr.bf16.mxu1 %v580_v17  ;;  %v23_v29 = vld [vmem:[%s1025_s1 + $0x20] sm:$0xff]  ;;  %v584_v30 = vpack.c.bf16 %v72_v28, %v71_v27  ;;  %v24_v31 = vld [vmem:[%s1025_s1 + $0x28] sm:$0xff]  ;;  %v42_v36 = vld [vmem:[%s1025_s1 + $0xb8] sm:$0xff] }
   0x9   :  { %v55_v32 = vld [vmem:[%s1025_s1 + $0x120] sm:$0xff]  ;;  %v56_v33 = vld [vmem:[%s1025_s1 + $0x128] sm:$0xff]  ;;  %v554_v34 = vpack.c.bf16 %v24_v31, %v23_v29  ;;  %v73_v37 = vld [vmem:[%s1025_s1 + $0x1b0] sm:$0xff]  ;;  %v556_v39 = vpack.c.bf16 %v42_v36, %v41_v35 }
   0xa   :  { %551 = vmatpush3.bf16.msra.mxu0 %v550_v21  ;;  %v586_v38 = vpack.c.bf16 %v56_v33, %v55_v32  ;;  %v74_v40 = vld [vmem:[%s1025_s1 + $0x1b8] sm:$0xff]  ;;  %v25_v41 = vld [vmem:[%s1025_s1 + $0x30] sm:$0xff]  ;;  %v43_v46 = vld [vmem:[%s1025_s1 + $0xc0] sm:$0xff] }
   0xb   :  { %583 = vmatpush3.bf16.msra.mxu1 %v582_v25  ;;  %553 = vmatprep.subr.bf16.mxu0 %v552_v26  ;;  %v26_v42 = vld [vmem:[%s1025_s1 + $0x38] sm:$0xff]  ;;  %v588_v43 = vpack.c.bf16 %v74_v40, %v73_v37  ;;  %v57_v44 = vld [vmem:[%s1025_s1 + $0x130] sm:$0xff]  ;;  %v44_v47 = vld [vmem:[%s1025_s1 + $0xc8] sm:$0xff] }
   0xc   :  { %585 = vmatprep.subr.bf16.mxu1 %v584_v30  ;;  %v58_v45 = vld [vmem:[%s1025_s1 + $0x138] sm:$0xff]  ;;  %v75_v48 = vld [vmem:[%s1025_s1 + $0x1c0] sm:$0xff]  ;;  %v76_v49 = vld [vmem:[%s1025_s1 + $0x1c8] sm:$0xff]  ;;  %v558_v50 = vpack.c.bf16 %v26_v42, %v25_v41  ;;  %v560_v52 = vpack.c.bf16 %v44_v47, %v43_v46 }
   0xd   :  { %v590_v51 = vpack.c.bf16 %v58_v45, %v57_v44  ;;  %v27_v53 = vld [vmem:[%s1025_s1 + $0x40] sm:$0xff]  ;;  %v28_v54 = vld [vmem:[%s1025_s1 + $0x48] sm:$0xff]  ;;  %v592_v56 = vpack.c.bf16 %v76_v49, %v75_v48  ;;  %v45_v58 = vld [vmem:[%s1025_s1 + $0xd0] sm:$0xff] }
   0xe   :  { %555 = vmatpush3.bf16.msra.mxu0 %v554_v34  ;;  %v59_v55 = vld [vmem:[%s1025_s1 + $0x140] sm:$0xff]  ;;  %v60_v57 = vld [vmem:[%s1025_s1 + $0x148] sm:$0xff]  ;;  %v46_v59 = vld [vmem:[%s1025_s1 + $0xd8] sm:$0xff]  ;;  %v562_v62 = vpack.c.bf16 %v28_v54, %v27_v53 }
   0xf   :  { %587 = vmatpush3.bf16.msra.mxu1 %v586_v38  ;;  %557 = vmatprep.subr.bf16.mxu0 %v556_v39  ;;  %v77_v60 = vld [vmem:[%s1025_s1 + $0x1d0] sm:$0xff]  ;;  %v78_v61 = vld [vmem:[%s1025_s1 + $0x1d8] sm:$0xff]  ;;  %v594_v63 = vpack.c.bf16 %v60_v57, %v59_v55  ;;  %v564_v0 = vpack.c.bf16 %v46_v59, %v45_v58  ;;  %v47_v6 = vld [vmem:[%s1025_s1 + $0xe0] sm:$0xff] }
  0x10   :  { %589 = vmatprep.subr.bf16.mxu1 %v588_v43  ;;  %v29_v1 = vld [vmem:[%s1025_s1 + $0x50] sm:$0xff]  ;;  %v30_v2 = vld [vmem:[%s1025_s1 + $0x58] sm:$0xff]  ;;  %v596_v4 = vpack.c.bf16 %v78_v61, %v77_v60  ;;  %v48_v7 = vld [vmem:[%s1025_s1 + $0xe8] sm:$0xff] }
  0x11   :  { %v61_v3 = vld [vmem:[%s1025_s1 + $0x150] sm:$0xff]  ;;  %v62_v5 = vld [vmem:[%s1025_s1 + $0x158] sm:$0xff]  ;;  %v79_v8 = vld [vmem:[%s1025_s1 + $0x1e0] sm:$0xff]  ;;  %v566_v10 = vpack.c.bf16 %v30_v2, %v29_v1  ;;  %v568_v14 = vpack.c.bf16 %v48_v7, %v47_v6 }
  0x12   :  { %559 = vmatpush3.bf16.msra.mxu0 %v558_v50  ;;  %v80_v9 = vld [vmem:[%s1025_s1 + $0x1e8] sm:$0xff]  ;;  %v31_v11 = vld [vmem:[%s1025_s1 + $0x60] sm:$0xff]  ;;  %v598_v13 = vpack.c.bf16 %v62_v5, %v61_v3  ;;  %v15_v17 = vld [vmem:[%s1024_s0 + $0x18] sm:$0xff]  ;;  %v675_v50 = vmov 0.0|0.0  }
  0x13   :  { %591 = vmatpush3.bf16.msra.mxu1 %v590_v51  ;;  %561 = vmatprep.subr.bf16.mxu0 %v560_v52  ;;  %v32_v12 = vld [vmem:[%s1025_s1 + $0x68] sm:$0xff]  ;;  %v63_v15 = vld [vmem:[%s1025_s1 + $0x160] sm:$0xff]  ;;  %v600_v18 = vpack.c.bf16 %v80_v9, %v79_v8  ;;  %v49_v20 = vld [vmem:[%s1025_s1 + $0xf0] sm:$0xff] }
  0x14   :  { %593 = vmatprep.subr.bf16.mxu1 %v592_v56  ;;  %v13_v16 = vld [vmem:[%s1024_s0 + $0x8] sm:$0xff]  ;;  %v50_v21 = vld [vmem:[%s1025_s1 + $0xf8] sm:$0xff]  ;;  %v81_v22 = vld [vmem:[%s1025_s1 + $0x1f0] sm:$0xff]  ;;  %255 = vmatprep.mubr.f32.mxu1 %v15_v17  ;;  %v570_v24 = vpack.c.bf16 %v32_v12, %v31_v11 }
  0x15   :  { %v64_v19 = vld [vmem:[%s1025_s1 + $0x168] sm:$0xff]  ;;  %185 = vmatprep.mubr.f32.mxu0 %v13_v16  ;;  %v82_v23 = vld [vmem:[%s1025_s1 + $0x1f8] sm:$0xff]  ;;  %v572_v26 = vpack.c.bf16 %v50_v21, %v49_v20  ;;  %v33_v27 = vld [vmem:[%s1025_s1 + $0x70] sm:$0xff] }
  0x16   :  { %563 = vmatpush3.bf16.msra.mxu0 %v562_v62  ;;  %v602_v25 = vpack.c.bf16 %v64_v19, %v63_v15  ;;  %v34_v28 = vld [vmem:[%s1025_s1 + $0x78] sm:$0xff]  ;;  %v65_v29 = vld [vmem:[%s1025_s1 + $0x170] sm:$0xff]  ;;  %v604_v30 = vpack.c.bf16 %v82_v23, %v81_v22  ;;  %v99_v32 = vld [vmem:[%s1025_s1 + $0x280] sm:$0xff] }
  0x17   :  { %595 = vmatpush3.bf16.msra.mxu1 %v594_v63  ;;  %565 = vmatprep.subr.bf16.mxu0 %v564_v0  ;;  %v66_v31 = vld [vmem:[%s1025_s1 + $0x178] sm:$0xff]  ;;  %v100_v33 = vld [vmem:[%s1025_s1 + $0x288] sm:$0xff]  ;;  %v574_v34 = vpack.c.bf16 %v34_v28, %v33_v27  ;;  %v83_v37 = vld [vmem:[%s1025_s1 + $0x200] sm:$0xff] }
  0x18   :  { %597 = vmatprep.subr.bf16.mxu1 %v596_v4  ;;  %v606_v35 = vpack.c.bf16 %v66_v31, %v65_v29  ;;  %v608_v36 = vpack.c.bf16 %v100_v33, %v99_v32  ;;  %v84_v38 = vld [vmem:[%s1025_s1 + $0x208] sm:$0xff]  ;;  %v101_v39 = vld [vmem:[%s1025_s1 + $0x290] sm:$0xff]  ;;  %v102_v40 = vld [vmem:[%s1025_s1 + $0x298] sm:$0xff] }
  0x19   :  { %v12_v41 = vld [vmem:[%s1024_s0] sm:$0xff]  ;;  %v14_v42 = vld [vmem:[%s1024_s0 + $0x10] sm:$0xff]  ;;  %v610_v43 = vpack.c.bf16 %v84_v38, %v83_v37  ;;  %v612_v45 = vpack.c.bf16 %v102_v40, %v101_v39  ;;  %v86_v46 = vld [vmem:[%s1025_s1 + $0x218] sm:$0xff] }
  0x1a   :  { %567 = vmatpush3.bf16.msra.mxu0 %v566_v10  ;;  %v85_v44 = vld [vmem:[%s1025_s1 + $0x210] sm:$0xff]  ;;  %v103_v47 = vld [vmem:[%s1025_s1 + $0x2a0] sm:$0xff]  ;;  %v104_v48 = vld [vmem:[%s1025_s1 + $0x2a8] sm:$0xff] }
  0x1b   :  { %599 = vmatpush3.bf16.msra.mxu1 %v598_v13  ;;  %569 = vmatprep.subr.bf16.mxu0 %v568_v14  ;;  %v17_v49 = vld [vmem:[%s1024_s0 + $0x28] sm:$0xff]  ;;  %v115_v51 = vld [vmem:[%s1025_s1 + $0x300] sm:$0xff] }
  0x1c   :  { %601 = vmatprep.subr.bf16.mxu1 %v600_v18  ;;  %v116_v52 = vld [vmem:[%s1025_s1 + $0x308] sm:$0xff] }
  0x1d   :  { %v641_v53 = vpack.c.bf16 %v116_v52, %v115_v51 }
  0x1e   :  { %571 = vmatpush3.bf16.msra.mxu0 %v570_v24 }
  0x1f   :  { %603 = vmatpush3.bf16.msra.mxu1 %v602_v25  ;;  %573 = vmatprep.subr.bf16.mxu0 %v572_v26 }
  0x20   :  { %605 = vmatprep.subr.bf16.mxu1 %v604_v30 }
  0x22   :  { %575 = vmatpush3.bf16.msra.mxu0 %v574_v34 }
  0x23   :  { %607 = vmatpush3.bf16.msra.mxu1 %v606_v35  ;;  %609 = vmatprep.subr.bf16.mxu0 %v608_v36 }
  0x24   :  { %640 = vmatprep.subr.bf16.mxu1 %v675_v50 }
  0x25   :  { %186 = vmatmul.mubr.f32.vlgmr.msra.gmra.mrb[0].mxu0 %v12_v41 }
  0x26   :  { %7 = vsyncpa [#allocation3], 0  ;;  %256 = vmatmul.mubr.f32.vlgmr.msra.gmra.mrb[0].mxu1 %v14_v42  ;;  %611 = vmatpush3.bf16.msra.mxu0 %v610_v43  ;;  %v614_v54 = vpack.c.bf16 %v86_v46, %v85_v44  ;;  %v616_v55 = vpack.c.bf16 %v104_v48, %v103_v47  ;;  %v87_v56 = vld [vmem:[%s1025_s1 + $0x220] sm:$0xff]  ;;  %v88_v57 = vld [vmem:[%s1025_s1 + $0x228] sm:$0xff]  ;;  %vm676_vm0 = vmmov 0   ;;  %v677_v60 = vmov 0.0  }
  0x27   :  { %613 = vmatprep.subr.bf16.mxu0 %v612_v45  ;;  %325 = vmatprep.mubr.f32.mxu0 %v17_v49  ;;  %v105_v58 = vld [vmem:[%s1025_s1 + $0x2b0] sm:$0xff]  ;;  %v106_v59 = vld [vmem:[%s1025_s1 + $0x2b8] sm:$0xff]  ;;  %vm117_vm1 = vcmask 130048   ;;  %v618_v62 = vpack.c.bf16 %v88_v57, %v87_v56  ;;  %v107_v2 = vld [vmem:[%s1025_s1 + $0x2c0] sm:$0xff]  ;;  %vm401_vm2 = vcmask 80896  }
  0x28   :  { %642 = vmatpush3.bf16.msra.mxu1 %v641_v53  ;;  %541 = vmatprep.mubr.msk.f32.mxu1 %vm676_vm0, %v677_v60  ;;  %v18_v61 = vld [vmem:[%s1024_s0 + $0x30] sm:$0xff]  ;;  %v620_v63 = vpack.c.bf16 %v106_v59, %v105_v58  ;;  %v90_v1 = vld [vmem:[%s1025_s1 + $0x238] sm:$0xff]  ;;  %v108_v3 = vld [vmem:[%s1025_s1 + $0x2c8] sm:$0xff] }
  0x29   :  { %v89_v0 = vld [vmem:[%s1025_s1 + $0x230] sm:$0xff]  ;;  %v624_v5 = vpack.c.bf16 %v108_v3, %v107_v2  ;;  %v91_v6 = vld [vmem:[%s1025_s1 + $0x240] sm:$0xff]  ;;  %v92_v7 = vld [vmem:[%s1025_s1 + $0x248] sm:$0xff] }
  0x2a   :  { %615 = vmatpush3.bf16.msra.mxu0 %v614_v54  ;;  %v622_v4 = vpack.c.bf16 %v90_v1, %v89_v0  ;;  %v109_v8 = vld [vmem:[%s1025_s1 + $0x2d0] sm:$0xff]  ;;  %v110_v9 = vld [vmem:[%s1025_s1 + $0x2d8] sm:$0xff]  ;;  %v626_v10 = vpack.c.bf16 %v92_v7, %v91_v6  ;;  %v111_v14 = vld [vmem:[%s1025_s1 + $0x2e0] sm:$0xff] }
  0x2b   :  { %617 = vmatprep.subr.bf16.mxu0 %v616_v55  ;;  %542 = vmatmul.mubr.msk.f32.vlgmr.msra.gmra.mrb[2].mxu1 %vm117_vm1, %v18_v61  ;;  %v628_v11 = vpack.c.bf16 %v110_v9, %v109_v8  ;;  %v93_v12 = vld [vmem:[%s1025_s1 + $0x250] sm:$0xff]  ;;  %v94_v13 = vld [vmem:[%s1025_s1 + $0x258] sm:$0xff]  ;;  %v112_v15 = vld [vmem:[%s1025_s1 + $0x2e8] sm:$0xff] }
  0x2c   :  { %v630_v16 = vpack.c.bf16 %v94_v13, %v93_v12  ;;  %v632_v17 = vpack.c.bf16 %v112_v15, %v111_v14  ;;  %v95_v18 = vld [vmem:[%s1025_s1 + $0x260] sm:$0xff]  ;;  %v96_v19 = vld [vmem:[%s1025_s1 + $0x268] sm:$0xff]  ;;  %v113_v20 = vld [vmem:[%s1025_s1 + $0x2f0] sm:$0xff] }
  0x2d   :  { %v114_v21 = vld [vmem:[%s1025_s1 + $0x2f8] sm:$0xff]  ;;  %v634_v22 = vpack.c.bf16 %v96_v19, %v95_v18  ;;  %v97_v24 = vld [vmem:[%s1025_s1 + $0x270] sm:$0xff]  ;;  %v16_v27 = vld [vmem:[%s1024_s0 + $0x20] sm:$0xff]  ;;  %s678_s0 = smov [#allocation2]  }
  0x2e   :  { %619 = vmatpush3.bf16.msra.mxu0 %v618_v62  ;;  %v636_v23 = vpack.c.bf16 %v114_v21, %v113_v20  ;;  %v98_v25 = vld [vmem:[%s1025_s1 + $0x278] sm:$0xff]  ;;  %s420_s1 = sshll.u32 %s678_s0, 4  ;;  %s421_s1 = int_to_ptr.vmem [resolvable:$true] %s420_s1 }
  0x2f   :  { %621 = vmatprep.subr.bf16.mxu0 %v620_v63  ;;  %v638_v26 = vpack.c.bf16 %v98_v25, %v97_v24  ;;  %s651_s23 = scalar_lea.vmem %s421_s1, 128  ;;  %p656_p1 = scmp.lt.s32.totalorder %s421_s1, %s421_s1 }
  0x30   :  { %p652_p0 = scmp.ne.s32.totalorder %s421_s1, %s651_s23  ;;  %p657_p2 = scmp.lt.s32.totalorder %s651_s23, %s651_s23 }
  0x32   :  { %623 = vmatpush3.bf16.msra.mxu0 %v622_v4  ;;  %p658_p3 = por %p657_p2, %p656_p1 }
  0x33   :  { %625 = vmatprep.subr.bf16.mxu0 %v624_v5 }
  0x34   :  { %p659_p4 = pnand %p658_p3, %p652_p0 }
  0x36   :  { %627 = vmatpush3.bf16.msra.mxu0 %v626_v10 }
  0x37   :  { %629 = vmatprep.subr.bf16.mxu0 %v628_v11 }
  0x3a   :  { %631 = vmatpush3.bf16.msra.mxu0 %v630_v16 }
  0x3b   :  { %633 = vmatprep.subr.bf16.mxu0 %v632_v17 }
  0x3e   :  { %635 = vmatpush3.bf16.msra.mxu0 %v634_v22 }
  0x3f   :  { %637 = vmatprep.subr.bf16.mxu0 %v636_v23 }
  0x42   :  { %639 = vmatpush3.bf16.msra.mxu0 %v638_v26 }
  0x45   :  { %326 = vmatmul.mubr.f32.vlgmr.msra.gmra.mrb[2].mxu0 %v16_v27 }
  0xf8   :  { %v461_v28 = vpop.f32.mrb[0].mxu0 }
  0xf9   :  { %v496_v29 = vpop.f32.mrb[0].mxu1  ;;  %v462_v30 = vpop.f32.mrb[1].mxu0 }
  0xfa   :  { %v463_v31 = vadd.f32 %v462_v30, %v461_v28  ;;  %v497_v32 = vpop.f32.mrb[1].mxu1 }
  0xfb   :  { %v498_v33 = vadd.f32 %v497_v32, %v496_v29 }
  0xfd   :  { %v258_v34 = vadd.f32 %v498_v33, %v463_v31 }
  0xfe   :  { %v397_v35 = vpop.f32.mrb[2].mxu1 }
  0xff   :  { %v543_v36 = vpop.f32.mrb[3].mxu1 }
 0x118   :  { %v531_v37 = vpop.f32.mrb[2].mxu0 }
 0x119   :  { %v532_v38 = vpop.f32.mrb[3].mxu0 }
 0x11a   :  { %v533_v39 = vadd.f32 %v532_v38, %v531_v37 }
 0x11c   :  { %v328_v40 = vadd.f32 %v533_v39, %v258_v34 }
 0x11e   :  { %v398_v41 = vadd.f32 %v397_v35, %v328_v40 }
 0x120   :  { %v402_v42 = vsel %vm401_vm2, %v398_v41, -inf }
 0x121   :  { %403 = vmax.xlane.f32.xlu0 %v402_v42 }
 0x1ae   :  { %v404_v43 = vpop.xlane.xlu0 %403 }
 0x1af   :  { %v405_v44 = vsub.f32 %v398_v41, %v404_v43 }
 0x1b1   :  { %v406_v45 = vmul.f32 1.442695, %v405_v44 }
 0x1b3   :  { %647 = vpow2.f32 %v406_v45 }
 0x1bd   :  { %v648_v46 = vpop.eup %647 }
 0x1be   :  { %v408_v47 = vsel %vm401_vm2, %v648_v46, 0.0 }
 0x1bf   :  { %409 = vadd.xlane.f32.xlu0 %v408_v47 }
 0x24c   :  { %v410_v48 = vpop.xlane.xlu0 %409 }
 0x24d   :  { %649 = vrcp.f32 %v410_v48 }
 0x257   :  { %v650_v49 = vpop.eup %649 }
 0x258   :  { %v412_v50 = vmul.f32 %v650_v49, %v648_v46 }
 0x25a   :  { %413 = vst.msk [vmem:[#allocation2] sm:$0xff] %vm401_vm2, %v412_v50 }
 0x25b   :  { %662 = shalt.err (!%p659_p4)
}
 0x25c   :  { %s663_s26 = scalar_lea.hbm %s1026_s2, 128 }
 0x25d   :  { %p664_p5 = scmp.ne.s32.totalorder %s1026_s2, %s663_s26  ;;  %p667_p6 = scmp.lt.u32.totalorder %s663_s26, %s1026_s2 }
 0x25f   :  { %p669_p7 = pnand %p667_p6, %p664_p5 }
 0x261   :  { %672 = shalt.err (!%p669_p7)
}
 0x262   :  { %423 = dma.vmem_to_hbm [thread:$0]  %s421_s1, 128, %s1026_s2, [#allocation3]  }
 0x263   :  { %673 = dma.done.wait [#allocation3], 128  }
 0x264   :  { %674 = vsyncadd [#allocation3], 4294967168 }
 0x265   :  { %427 = vsyncpa [#allocation3], 1 }

</bundles_post_ra>
